<compile_context>
chip_gen: v6e
topology: v6e:2x2x1
jax: 0.10.0
libtpu: 0.0.40
codegen_flags: <defaults>
</compile_context>

<pallas_src>
import jax
import jax.numpy as jnp
import numpy as np
from jax.experimental import pallas as pl
from jax.experimental.pallas import tpu as pltpu


# --------------------------------------------------------------------------- #
# Pallas kernel: 1x1 classifier conv + ReLU on both views                      #
# --------------------------------------------------------------------------- #
def cam_head_kernel(w_ref, x_ref, o_ref):
    # 1x1 conv over channels == [K, C] @ [C, tn] matmul on the MXU.  The two
    # batch views share the VMEM-resident bf16 weight tile; features are cast to
    # bf16 in-register if the producer handed us f32 (single HBM pass either
    # way).  ReLU runs on the VPU; the flip/add of the two views happens on the
    # tiny output in the wrapper (flip commutes with 1x1 conv + ReLU).
    w = w_ref[...]
    x0 = x_ref[0]
    x1 = x_ref[1]
    if x0.dtype != w.dtype:
        x0 = x0.astype(w.dtype)
        x1 = x1.astype(w.dtype)
    o_ref[0] = jnp.maximum(jnp.dot(w, x0, preferred_element_type=jnp.float32), 0.0)
    o_ref[1] = jnp.maximum(jnp.dot(w, x1, preferred_element_type=jnp.float32), 0.0)


def _num_tensorcores():
    # v7x has 2 TensorCores per chip; v5e/v6e have 1.  Fall back to 1 if the
    # device kind is not recognizable.
    try:
        kind = jax.devices()[0].device_kind.lower()
    except Exception:
        return 1
    return 2 if ("v7" in kind or "7x" in kind) else 1


_FEATURE_TILE_VMEM_BUDGET = 24 * 1024 * 1024   # headroom under the 32 MiB scoped limit


def _pick_spatial_tile(hw, c, itemsize, num_tc):
    def fits(tn):
        # double-buffered [2, C, tn] feature tiles dominate the VMEM footprint
        return 2 * c * tn * itemsize * 2 <= _FEATURE_TILE_VMEM_BUDGET

    if num_tc >= 2:
        # Multi-TC (v7x): ensure >= num_tc lane-dense tiles so the "parallel"
        # grid axis actually gives both cores work.
        for cand in (512, 256, 128):
            if hw % cand == 0 and hw // cand >= num_tc and fits(cand):
                return cand
    # Single-TC (v5e/v6e) or un-splittable map: one full-extent tile if it fits
    # (fewest grid steps, fully contiguous DMA rows); otherwise the largest
    # lane-dense tile under the VMEM budget (>= 512 keeps DMA rows >= 1 KB).
    if fits(hw) or hw % 128 != 0:
        return hw
    for cand in (2048, 1024, 512, 256, 128):
        if hw % cand == 0 and fits(cand):
            return cand
    return hw


def cam_head(feat_nchw, cls_w):
    """feat_nchw: [2, C, H, W] backbone features (bf16 or f32);
    cls_w: [K, C, 1, 1] classifier weight.  Returns the CAM, shape [K, H, W]."""
    B, C, H, W = feat_nchw.shape
    assert B == 2, "CAM.forward expects an (image, horizontally-flipped image) pair"
    K = cls_w.shape[0]
    HW = H * W

    # Free reshape of contiguous NCHW -> no extra HBM pass before the kernel.
    x = feat_nchw.reshape(B, C, HW)
    w = cls_w.reshape(K, C).astype(jnp.bfloat16)          # tiny [K, C] weight

    itemsize = jnp.dtype(x.dtype).itemsize
    tn = _pick_spatial_tile(HW, C, itemsize, _num_tensorcores())
    grid = (HW // tn,)

    flops = 2 * B * K * C * HW                            # two K x C x HW matmuls
    bytes_accessed = x.size * itemsize + w.size * 2 + B * K * HW * 4

    out = pl.pallas_call(
        cam_head_kernel,
        out_shape=jax.ShapeDtypeStruct((B, K, HW), jnp.float32),
        grid=grid,
        in_specs=[
            pl.BlockSpec((K, C), lambda j: (0, 0)),           # resident classifier weight
            pl.BlockSpec((B, C, tn), lambda j: (0, 0, j)),    # streamed feature tiles
        ],
        out_specs=pl.BlockSpec((B, K, tn), lambda j: (0, 0, j)),  # lane-dense stores
        compiler_params=pltpu.CompilerParams(
            dimension_semantics=("parallel",),                # shards across v7x's two TCs
            vmem_limit_bytes=32 * 1024 * 1024,                # safe for v7x 64 MiB physical
        ),
        cost_estimate=pl.CostEstimate(flops=flops, transcendentals=0,
                                      bytes_accessed=bytes_accessed),
    )(w, x)

    # Flip the *output* of the second view along W (commutes with 1x1 conv+ReLU)
    # and add.  Output is only B*K*HW*4 bytes, so this is essentially free.
    y = out.reshape(B, K, H, W)
    return y[0] + y[1, :, :, ::-1]


# --------------------------------------------------------------------------- #
# ResNet-50 backbone (stage1..stage4) as plain-JAX glue, NCHW.                 #
# TODO(synk): the real CAM uses an ImageNet-pretrained ResNet-50 (widths       #
# 64..2048); here the same block structure ([3,4,6,3] bottlenecks, strides     #
# (2,2,2,1)) is built with width-scaled, deterministically-initialized weights #
# (no checkpoint loading).                                                     #
# --------------------------------------------------------------------------- #
def _conv(x, w, stride=1, padding=0):
    return jax.lax.conv_general_dilated(
        x, w, window_strides=(stride, stride),
        padding=[(padding, padding), (padding, padding)],
        dimension_numbers=('NCHW', 'OIHW', 'NCHW'))


def _bn(x, p):  # inference-mode batchnorm
    g, b, m, v = p
    inv = g * jax.lax.rsqrt(v + 1e-5)
    return x * inv[None, :, None, None] + (b - m * inv)[None, :, None, None]


def _maxpool_3x3_s2(x):
    return jax.lax.reduce_window(
        x, -jnp.inf, jax.lax.max,
        window_dimensions=(1, 1, 3, 3), window_strides=(1, 1, 2, 2),
        padding=[(0, 0), (0, 0), (1, 1), (1, 1)])


class ParamGen:
    def __init__(self, key):
        self._key = key
        self._n = 0

    def _next(self):
        self._n += 1
        return jax.random.fold_in(self._key, self._n)

    def conv(self, out_c, in_c, kh, kw):
        fan_in = in_c * kh * kw
        return (jax.random.normal(self._next(), (out_c, in_c, kh, kw), jnp.float32)
                * np.sqrt(2.0 / fan_in))

    def bn(self, c):
        g = 1.0 + 0.05 * jax.random.normal(self._next(), (c,), jnp.float32)
        b = 0.05 * jax.random.normal(self._next(), (c,), jnp.float32)
        m = 0.05 * jax.random.normal(self._next(), (c,), jnp.float32)
        v = 1.0 + 0.05 * jnp.abs(jax.random.normal(self._next(), (c,), jnp.float32))
        return (g, b, m, v)


def make_bottleneck(pg, inplanes, planes, stride, downsample):
    p = dict(
        w1=pg.conv(planes, inplanes, 1, 1), bn1=pg.bn(planes),
        w2=pg.conv(planes, planes, 3, 3),   bn2=pg.bn(planes),
        w3=pg.conv(planes * 4, planes, 1, 1), bn3=pg.bn(planes * 4),
        stride=stride)
    if downsample:
        p['wd'] = pg.conv(planes * 4, inplanes, 1, 1)
        p['bnd'] = pg.bn(planes * 4)
    return p


def bottleneck_fwd(x, p):
    out = jax.nn.relu(_bn(_conv(x, p['w1']), p['bn1']))
    out = jax.nn.relu(_bn(_conv(out, p['w2'], stride=p['stride'], padding=1), p['bn2']))
    out = _bn(_conv(out, p['w3']), p['bn3'])
    identity = _bn(_conv(x, p['wd'], stride=p['stride']), p['bnd']) if 'wd' in p else x
    return jax.nn.relu(out + identity)


def make_params(pg, base=8, num_classes=20):
    # (planes, num_blocks, layer_stride); resnet50(strides=(2,2,2,1)) =>
    # conv1 stride 2, layer1 stride 1, layer2 stride 2, layer3 stride 2, layer4 stride 1
    cfg = [(base, 3, 1), (base * 2, 4, 2), (base * 4, 6, 2), (base * 8, 3, 1)]
    params = {'conv1': pg.conv(base, 3, 7, 7), 'bn1': pg.bn(base)}
    inplanes = base
    for li, (planes, blocks, stride) in enumerate(cfg, start=1):
        blocks_p = []
        for bi in range(blocks):
            s = stride if bi == 0 else 1
            ds = (bi == 0) and (s != 1 or inplanes != planes * 4)
            blocks_p.append(make_bottleneck(pg, inplanes, planes, s, ds))
            inplanes = planes * 4
        params[f'layer{li}'] = blocks_p
    params['classifier'] = pg.conv(num_classes, inplanes, 1, 1)  # Conv2d(C,20,1,bias=False)
    return params


def backbone_forward(params, x, feature_dtype=jnp.bfloat16):
    # stage1: conv1 -> bn1 -> relu -> maxpool -> layer1
    x = _conv(x, params['conv1'], stride=2, padding=3)
    x = jax.nn.relu(_bn(x, params['bn1']))
    x = _maxpool_3x3_s2(x)
    for li in range(1, 5):                      # layer1 .. layer4 (stage1..stage4)
        for bp in params[f'layer{li}']:
            x = bottleneck_fwd(x, bp)
    # Producer-side cast: the last ReLU fusion emits bf16, so the CAM head reads
    # half the HBM bytes with no extra pass over the features.
    return x.astype(feature_dtype)


# --------------------------------------------------------------------------- #
if __name__ == "__main__":
    key = jax.random.PRNGKey(0)
    pg = ParamGen(key)
    params = make_params(pg)

    # CAM is fed an (image, horizontally-flipped image) pair -> batch of 2, NCHW.
    # 256x256 input -> 16x16 feature map (HW=256).  On single-TC chips (v5e/v6e)
    # the head runs as one full-extent tile (tn=256, grid=(1,)); on v7x it splits
    # into two 128-wide lane-dense tiles (tn=128, grid=(2,)) so both TCs work.
    x_img = jax.random.normal(jax.random.fold_in(key, 12345),
                              (1, 3, 256, 256), jnp.float32)
    x = jnp.concatenate([x_img, x_img[..., ::-1]], axis=0)          # [2, 3, 256, 256]

    feats = backbone_forward(params, x)                             # [2, 256, 16, 16] bf16
    cam = cam_head(feats, params['classifier'])                     # [20, 16, 16]
    cam = jax.block_until_ready(cam)

    # Pure-JAX reference of the CAM head.  The kernel consumes bf16-quantized
    # features/weights (by design, per perf review), so the reference applies the
    # same quantization and accumulates in f32; remaining differences are only
    # MXU vs XLA accumulation order.
    K = params['classifier'].shape[0]
    f_q = feats.astype(jnp.bfloat16).astype(jnp.float32)
    w_q = params['classifier'].reshape(K, -1).astype(jnp.bfloat16).astype(jnp.float32)
    ref = jnp.einsum('bchw,kc->bkhw', f_q, w_q,
                     precision=jax.lax.Precision.HIGHEST)
    ref = jax.nn.relu(ref)
    ref = ref[0] + ref[1][..., ::-1]

    assert cam.shape == (K, feats.shape[2], feats.shape[3])
    np.testing.assert_allclose(np.asarray(cam), np.asarray(ref), rtol=2e-2, atol=2e-2)

    print("KERNEL_OK")
</pallas_src>

<mosaic_0001>
module attributes {stable_mosaic.version = 11 : i64} {
  func.func @cam_head_kernel(%arg0: i32, %arg1: memref<20x256xbf16, #tpu.memory_space<vmem>>, %arg2: memref<2x256x256xbf16, #tpu.memory_space<vmem>>, %arg3: memref<2x20x256xf32, #tpu.memory_space<vmem>>) attributes {dimension_semantics = [#tpu.dimension_semantics<parallel>], iteration_bounds = array<i64: 1>, scalar_prefetch = 0 : i64, scratch_operands = 0 : i64, tpu.core_type = #tpu.core_type<tc>, window_params = [{pipeline_mode = #tpu.pipeline_mode<synchronous>, transform_indices = @transform_0, window_bounds = array<i64: 20, 256>}, {transform_indices = @transform_1, window_bounds = array<i64: 2, 256, 256>}, {transform_indices = @transform_2, window_bounds = array<i64: 2, 20, 256>}]} {
    %c0 = arith.constant 0 : index
    %c0_0 = arith.constant 0 : index
    %0 = vector.load %arg1[%c0, %c0_0] : memref<20x256xbf16, #tpu.memory_space<vmem>>, vector<20x256xbf16>
    %c0_1 = arith.constant 0 : index
    %c0_2 = arith.constant 0 : index
    %c0_3 = arith.constant 0 : index
    %1 = vector.load %arg2[%c0_1, %c0_2, %c0_3] : memref<2x256x256xbf16, #tpu.memory_space<vmem>>, vector<1x256x256xbf16>
    %2 = vector.shape_cast %1 : vector<1x256x256xbf16> to vector<256x256xbf16>
    %c1 = arith.constant 1 : index
    %c0_4 = arith.constant 0 : index
    %c0_5 = arith.constant 0 : index
    %3 = vector.load %arg2[%c1, %c0_4, %c0_5] : memref<2x256x256xbf16, #tpu.memory_space<vmem>>, vector<1x256x256xbf16>
    %4 = vector.shape_cast %3 : vector<1x256x256xbf16> to vector<256x256xbf16>
    %cst = arith.constant dense<0.000000e+00> : vector<20x256xf32>
    %5 = tpu.matmul %0, %2, %cst {dimension_numbers = #tpu.dot_dimension_numbers<[1], [0], [0], [1], [0, 0, 1, 1], [], []>} : vector<20x256xbf16>, vector<256x256xbf16>, vector<20x256xf32> -> vector<20x256xf32>
    %cst_6 = arith.constant 0.000000e+00 : f32
    %6 = vector.broadcast %cst_6 : f32 to vector<20x256xf32>
    %7 = arith.maximumf %5, %6 : vector<20x256xf32>
    %c0_7 = arith.constant 0 : index
    %c0_8 = arith.constant 0 : index
    %c0_9 = arith.constant 0 : index
    %8 = vector.load %arg3[%c0_7, %c0_8, %c0_9] : memref<2x20x256xf32, #tpu.memory_space<vmem>>, vector<1x20x256xf32>
    %9 = vector.shape_cast %8 : vector<1x20x256xf32> to vector<20x256xf32>
    %10 = vector.shape_cast %7 : vector<20x256xf32> to vector<1x20x256xf32>
    tpu.vector_store %arg3[%c0_7, %c0_8, %c0_9], %10 {strides = array<i32>} : memref<2x20x256xf32, #tpu.memory_space<vmem>>, vector<1x20x256xf32>,
    %cst_10 = arith.constant dense<0.000000e+00> : vector<20x256xf32>
    %11 = tpu.matmul %0, %4, %cst_10 {dimension_numbers = #tpu.dot_dimension_numbers<[1], [0], [0], [1], [0, 0, 1, 1], [], []>} : vector<20x256xbf16>, vector<256x256xbf16>, vector<20x256xf32> -> vector<20x256xf32>
    %cst_11 = arith.constant 0.000000e+00 : f32
    %12 = vector.broadcast %cst_11 : f32 to vector<20x256xf32>
    %13 = arith.maximumf %11, %12 : vector<20x256xf32>
    %c1_12 = arith.constant 1 : index
    %c0_13 = arith.constant 0 : index
    %c0_14 = arith.constant 0 : index
    %14 = vector.load %arg3[%c1_12, %c0_13, %c0_14] : memref<2x20x256xf32, #tpu.memory_space<vmem>>, vector<1x20x256xf32>
    %15 = vector.shape_cast %14 : vector<1x20x256xf32> to vector<20x256xf32>
    %16 = vector.shape_cast %13 : vector<20x256xf32> to vector<1x20x256xf32>
    tpu.vector_store %arg3[%c1_12, %c0_13, %c0_14], %16 {strides = array<i32>} : memref<2x20x256xf32, #tpu.memory_space<vmem>>, vector<1x20x256xf32>,
    return
  }
  func.func @transform_0(%arg0: i32) -> (i32, i32) {
    %c0_i32 = arith.constant 0 : i32
    %c0_i32_0 = arith.constant 0 : i32
    %c0_i32_1 = arith.constant 0 : i32
    return %c0_i32, %c0_i32_0 : i32, i32
  }
  func.func @transform_1(%arg0: i32) -> (i32, i32, i32) {
    %c0_i32 = arith.constant 0 : i32
    %c0_i32_0 = arith.constant 0 : i32
    %c0_i32_1 = arith.constant 0 : i32
    return %c0_i32, %c0_i32_0, %arg0 : i32, i32, i32
  }
  func.func @transform_2(%arg0: i32) -> (i32, i32, i32) {
    %c0_i32 = arith.constant 0 : i32
    %c0_i32_0 = arith.constant 0 : i32
    %c0_i32_1 = arith.constant 0 : i32
    return %c0_i32, %c0_i32_0, %arg0 : i32, i32, i32
  }
}

</mosaic_0001>

<bundles_post_ra>
// kernel: tpu_custom_call.1
= control target key start
LH: loop header
LB: loop body
LE: loop exit
PB: predicated region body
PF: predicated region fallthrough
CT: control target
= control target key end

     0   :  { %7 = vsyncpa [#allocation3], 0  ;;  %s861_s0 = inlined_call_operand.hbm [shape: bf16[20,256], index: 0, kind: input, shape index: {}]   ;;  %s862_s1 = inlined_call_operand.hbm [shape: bf16[2,256,256], index: 1, kind: input, shape index: {}]   ;;  %s863_s2 = inlined_call_operand.vmem [shape: f32[2,20,256], index: 2, kind: output, shape index: {}]  }
   0x1   :  { %8 = vsyncpa [#allocation5], 0  ;;  %s800_s9 = smov [#allocation2]  }
   0x2   :  { %s14_s10 = sshll.u32 %s800_s9, 4  ;;  %s15_s10 = int_to_ptr.vmem [resolvable:$true] %s14_s10 }
   0x3   :  { %s764_s11 = scalar_lea.vmem %s15_s10, 384  ;;  %p769_p1 = scmp.lt.s32.totalorder %s15_s10, %s15_s10 }
   0x4   :  { %p765_p0 = scmp.ne.s32.totalorder %s15_s10, %s764_s11  ;;  %p770_p2 = scmp.lt.s32.totalorder %s764_s11, %s764_s11 }
   0x6   :  { %p771_p3 = por %p770_p2, %p769_p1 }
   0x8   :  { %p772_p4 = pnand %p771_p3, %p765_p0 }
   0xa   :  { %775 = shalt.err (!%p772_p4)
}
   0xb   :  { %s801_s12 = smov 128   ;;  %s802_s13 = smov 8  }
   0xc   :  { %20 = dma.hbm_to_vmem [thread:$0]  %s861_s0, 384, %s15_s10, [#allocation3], %s801_s12, %s801_s12, %s802_s13  }
   0xd   :  { %s803_s16 = smov [#allocation4]  }
   0xe   :  { %s26_s17 = sshll.u32 %s803_s16, 4  ;;  %s27_s17 = int_to_ptr.vmem [resolvable:$true] %s26_s17 }
   0xf   :  { %s784_s18 = scalar_lea.vmem %s27_s17, 8192  ;;  %p789_p6 = scmp.lt.s32.totalorder %s27_s17, %s27_s17 }
  0x10   :  { %p785_p5 = scmp.ne.s32.totalorder %s27_s17, %s784_s18  ;;  %p790_p7 = scmp.lt.s32.totalorder %s784_s18, %s784_s18 }
  0x12   :  { %p791_p8 = por %p790_p7, %p789_p6 }
  0x14   :  { %p792_p9 = pnand %p791_p8, %p785_p5 }
  0x16   :  { %795 = shalt.err (!%p792_p9)
}
  0x17   :  { %32 = dma.hbm_to_vmem [thread:$0]  %s862_s1, 8192, %s27_s17, [#allocation5], %s801_s12, %s801_s12, %s802_s13  }
  0x18   :  { %796 = dma.done.wait [#allocation3], 384  }
  0x19   :  { %797 = vsyncadd [#allocation3], 4294966912 }
  0x1a   :  { %798 = dma.done.wait [#allocation5], 8192  }
  0x1b   :  { %799 = vsyncadd [#allocation5], 4294959104  ;;  %v655_v0 = vld [vmem:[#allocation4 + $0x74] ss:$8 sps:$4 sm:$0xff]   ;;  %v659_v2 = vld [vmem:[#allocation4 + $0x70] ss:$8 sps:$4 sm:$0xff]  }
  0x1c   :  { %v657_v1 = vld [vmem:[#allocation4 + $0x174] ss:$8 sps:$4 sm:$0xff]   ;;  %284 = vmatprep.subr.bf16.mxu0 %v655_v0  ;;  %v660_v3 = vld [vmem:[#allocation4 + $0x170] ss:$8 sps:$4 sm:$0xff]   ;;  %v661_v4 = vld [vmem:[#allocation4 + $0x64] ss:$8 sps:$4 sm:$0xff]  }
  0x1d   :  { %507 = vmatprep.subr.bf16.mxu1 %v657_v1  ;;  %285 = vmatpush1.bf16.msra.mxu0 %v659_v2  ;;  %v663_v5 = vld [vmem:[#allocation4 + $0x164] ss:$8 sps:$4 sm:$0xff]   ;;  %v665_v6 = vld [vmem:[#allocation4 + $0x60] ss:$8 sps:$4 sm:$0xff]   ;;  %v667_v8 = vld [vmem:[#allocation4 + $0x54] ss:$8 sps:$4 sm:$0xff]  }
  0x1e   :  { %508 = vmatpush1.bf16.msra.mxu1 %v660_v3  ;;  %286 = vmatprep.subr.bf16.mxu0 %v661_v4  ;;  %v666_v7 = vld [vmem:[#allocation4 + $0x160] ss:$8 sps:$4 sm:$0xff]   ;;  %v669_v9 = vld [vmem:[#allocation4 + $0x154] ss:$8 sps:$4 sm:$0xff]   ;;  %v671_v10 = vld [vmem:[#allocation4 + $0x50] ss:$8 sps:$4 sm:$0xff]  }
  0x1f   :  { %509 = vmatprep.subr.bf16.mxu1 %v663_v5  ;;  %v672_v11 = vld [vmem:[#allocation4 + $0x150] ss:$8 sps:$4 sm:$0xff]   ;;  %v673_v12 = vld [vmem:[#allocation4 + $0x44] ss:$8 sps:$4 sm:$0xff]   ;;  %v677_v14 = vld [vmem:[#allocation4 + $0x40] ss:$8 sps:$4 sm:$0xff]  }
  0x20   :  { %v675_v13 = vld [vmem:[#allocation4 + $0x144] ss:$8 sps:$4 sm:$0xff]   ;;  %v678_v15 = vld [vmem:[#allocation4 + $0x140] ss:$8 sps:$4 sm:$0xff]   ;;  %v679_v16 = vld [vmem:[#allocation4 + $0x34] ss:$8 sps:$4 sm:$0xff]  }
  0x21   :  { %287 = vmatpush1.bf16.msra.mxu0 %v665_v6  ;;  %v681_v17 = vld [vmem:[#allocation4 + $0x134] ss:$8 sps:$4 sm:$0xff]   ;;  %v683_v18 = vld [vmem:[#allocation4 + $0x30] ss:$8 sps:$4 sm:$0xff]   ;;  %v685_v20 = vld [vmem:[#allocation4 + $0x24] ss:$8 sps:$4 sm:$0xff]  }
  0x22   :  { %510 = vmatpush1.bf16.msra.mxu1 %v666_v7  ;;  %288 = vmatprep.subr.bf16.mxu0 %v667_v8  ;;  %v684_v19 = vld [vmem:[#allocation4 + $0x130] ss:$8 sps:$4 sm:$0xff]   ;;  %v687_v21 = vld [vmem:[#allocation4 + $0x124] ss:$8 sps:$4 sm:$0xff]   ;;  %v689_v22 = vld [vmem:[#allocation4 + $0x20] ss:$8 sps:$4 sm:$0xff]  }
  0x23   :  { %511 = vmatprep.subr.bf16.mxu1 %v669_v9  ;;  %v690_v23 = vld [vmem:[#allocation4 + $0x120] ss:$8 sps:$4 sm:$0xff]   ;;  %v691_v24 = vld [vmem:[#allocation4 + $0x14] ss:$8 sps:$4 sm:$0xff]   ;;  %v695_v26 = vld [vmem:[#allocation4 + $0x10] ss:$8 sps:$4 sm:$0xff]  }
  0x24   :  { %v693_v25 = vld [vmem:[#allocation4 + $0x114] ss:$8 sps:$4 sm:$0xff]   ;;  %v696_v27 = vld [vmem:[#allocation4 + $0x110] ss:$8 sps:$4 sm:$0xff]   ;;  %v697_v28 = vld [vmem:[#allocation4 + $0x4] ss:$8 sps:$4 sm:$0xff]  }
  0x25   :  { %289 = vmatpush1.bf16.msra.mxu0 %v671_v10  ;;  %v699_v29 = vld [vmem:[#allocation4 + $0x104] ss:$8 sps:$4 sm:$0xff]   ;;  %v701_v30 = vld [vmem:[#allocation4] ss:$8 sps:$4 sm:$0xff]   ;;  %v703_v32 = vld [vmem:[#allocation4 + $0xf4] ss:$8 sps:$4 sm:$0xff]  }
  0x26   :  { %512 = vmatpush1.bf16.msra.mxu1 %v672_v11  ;;  %290 = vmatprep.subr.bf16.mxu0 %v673_v12  ;;  %v702_v31 = vld [vmem:[#allocation4 + $0x100] ss:$8 sps:$4 sm:$0xff]   ;;  %v705_v33 = vld [vmem:[#allocation4 + $0x1f4] ss:$8 sps:$4 sm:$0xff]   ;;  %v707_v34 = vld [vmem:[#allocation4 + $0xf0] ss:$8 sps:$4 sm:$0xff]  }
  0x27   :  { %513 = vmatprep.subr.bf16.mxu1 %v675_v13  ;;  %v708_v35 = vld [vmem:[#allocation4 + $0x1f0] ss:$8 sps:$4 sm:$0xff]   ;;  %v709_v36 = vld [vmem:[#allocation4 + $0xe4] ss:$8 sps:$4 sm:$0xff]   ;;  %v713_v38 = vld [vmem:[#allocation4 + $0xe0] ss:$8 sps:$4 sm:$0xff]  }
  0x28   :  { %v711_v37 = vld [vmem:[#allocation4 + $0x1e4] ss:$8 sps:$4 sm:$0xff]   ;;  %v714_v39 = vld [vmem:[#allocation4 + $0x1e0] ss:$8 sps:$4 sm:$0xff]   ;;  %v715_v40 = vld [vmem:[#allocation4 + $0xd4] ss:$8 sps:$4 sm:$0xff]  }
  0x29   :  { %291 = vmatpush1.bf16.msra.mxu0 %v677_v14  ;;  %v717_v41 = vld [vmem:[#allocation4 + $0x1d4] ss:$8 sps:$4 sm:$0xff]   ;;  %v719_v42 = vld [vmem:[#allocation4 + $0xd0] ss:$8 sps:$4 sm:$0xff]   ;;  %v721_v44 = vld [vmem:[#allocation4 + $0xc4] ss:$8 sps:$4 sm:$0xff]  }
  0x2a   :  { %514 = vmatpush1.bf16.msra.mxu1 %v678_v15  ;;  %292 = vmatprep.subr.bf16.mxu0 %v679_v16  ;;  %v720_v43 = vld [vmem:[#allocation4 + $0x1d0] ss:$8 sps:$4 sm:$0xff]   ;;  %v723_v45 = vld [vmem:[#allocation4 + $0x1c4] ss:$8 sps:$4 sm:$0xff]   ;;  %v725_v47 = vld [vmem:[#allocation4 + $0xc0] ss:$8 sps:$4 sm:$0xff]  }
  0x2b   :  { %515 = vmatprep.subr.bf16.mxu1 %v681_v17  ;;  %v753_v46 = vld [vmem:[#allocation2 + $0x4] ss:$8 sps:$4 sm:$0xff]   ;;  %v726_v48 = vld [vmem:[#allocation4 + $0x1c0] ss:$8 sps:$4 sm:$0xff]   ;;  %v731_v51 = vld [vmem:[#allocation4 + $0xb0] ss:$8 sps:$4 sm:$0xff]  }
  0x2c   :  { %v727_v49 = vld [vmem:[#allocation4 + $0xb4] ss:$8 sps:$4 sm:$0xff]   ;;  %316 = vmatprep.mubr.bf16.mxu0 %v753_v46  ;;  %539 = vmatprep.mubr.bf16.mxu1 %v753_v46  ;;  %v732_v52 = vld [vmem:[#allocation4 + $0x1b0] ss:$8 sps:$4 sm:$0xff]   ;;  %v733_v53 = vld [vmem:[#allocation4 + $0xa4] ss:$8 sps:$4 sm:$0xff]  }
  0x2d   :  { %293 = vmatpush1.bf16.msra.mxu0 %v683_v18  ;;  %v729_v50 = vld [vmem:[#allocation4 + $0x1b4] ss:$8 sps:$4 sm:$0xff]   ;;  %v735_v54 = vld [vmem:[#allocation4 + $0x1a4] ss:$8 sps:$4 sm:$0xff]   ;;  %v737_v55 = vld [vmem:[#allocation4 + $0xa0] ss:$8 sps:$4 sm:$0xff]  }
  0x2e   :  { %516 = vmatpush1.bf16.msra.mxu1 %v684_v19  ;;  %294 = vmatprep.subr.bf16.mxu0 %v685_v20  ;;  %v738_v56 = vld [vmem:[#allocation4 + $0x1a0] ss:$8 sps:$4 sm:$0xff]   ;;  %v739_v57 = vld [vmem:[#allocation4 + $0x94] ss:$8 sps:$4 sm:$0xff]   ;;  %v743_v59 = vld [vmem:[#allocation4 + $0x90] ss:$8 sps:$4 sm:$0xff]  }
  0x2f   :  { %517 = vmatprep.subr.bf16.mxu1 %v687_v21  ;;  %v741_v58 = vld [vmem:[#allocation4 + $0x194] ss:$8 sps:$4 sm:$0xff]   ;;  %v744_v60 = vld [vmem:[#allocation4 + $0x190] ss:$8 sps:$4 sm:$0xff]   ;;  %v745_v61 = vld [vmem:[#allocation4 + $0x84] ss:$8 sps:$4 sm:$0xff]  }
  0x30   :  { %v747_v62 = vld [vmem:[#allocation4 + $0x184] ss:$8 sps:$4 sm:$0xff]   ;;  %v749_v63 = vld [vmem:[#allocation4 + $0x80] ss:$8 sps:$4 sm:$0xff]   ;;  %v41_v1 = vld [vmem:[#allocation2 + $0x10] sm:$0x33] }
  0x31   :  { %295 = vmatpush1.bf16.msra.mxu0 %v689_v22  ;;  %v750_v0 = vld [vmem:[#allocation4 + $0x180] ss:$8 sps:$4 sm:$0xff]   ;;  %v580_v3 = vcombine.high %v41_v1, %v41_v1  ;;  %v579_v4 = vcombine.low %v41_v1, %v41_v1 }
  0x32   :  { %518 = vmatpush1.bf16.msra.mxu1 %v690_v23  ;;  %296 = vmatprep.subr.bf16.mxu0 %v691_v24  ;;  %v751_v2 = vld [vmem:[#allocation2] ss:$8 sps:$4 sm:$0xff]  }
  0x33   :  { %519 = vmatprep.subr.bf16.mxu1 %v693_v25 }
  0x35   :  { %297 = vmatpush1.bf16.msra.mxu0 %v695_v26 }
  0x36   :  { %520 = vmatpush1.bf16.msra.mxu1 %v696_v27  ;;  %298 = vmatprep.subr.bf16.mxu0 %v697_v28 }
  0x37   :  { %521 = vmatprep.subr.bf16.mxu1 %v699_v29 }
  0x39   :  { %299 = vmatpush1.bf16.msra.mxu0 %v701_v30 }
  0x3a   :  { %522 = vmatpush1.bf16.msra.mxu1 %v702_v31  ;;  %300 = vmatprep.subr.bf16.mxu0 %v703_v32 }
  0x3b   :  { %523 = vmatprep.subr.bf16.mxu1 %v705_v33 }
  0x3d   :  { %301 = vmatpush2.bf16.msra.mxu0 %v707_v34 }
  0x3e   :  { %524 = vmatpush2.bf16.msra.mxu1 %v708_v35  ;;  %302 = vmatprep.subr.bf16.mxu0 %v709_v36 }
  0x3f   :  { %525 = vmatprep.subr.bf16.mxu1 %v711_v37 }
  0x41   :  { %303 = vmatpush2.bf16.msra.mxu0 %v713_v38 }
  0x42   :  { %526 = vmatpush2.bf16.msra.mxu1 %v714_v39  ;;  %304 = vmatprep.subr.bf16.mxu0 %v715_v40 }
  0x43   :  { %527 = vmatprep.subr.bf16.mxu1 %v717_v41 }
  0x45   :  { %305 = vmatpush2.bf16.msra.mxu0 %v719_v42 }
  0x46   :  { %528 = vmatpush2.bf16.msra.mxu1 %v720_v43  ;;  %306 = vmatprep.subr.bf16.mxu0 %v721_v44 }
  0x47   :  { %529 = vmatprep.subr.bf16.mxu1 %v723_v45 }
  0x49   :  { %307 = vmatpush2.bf16.msra.mxu0 %v725_v47 }
  0x4a   :  { %530 = vmatpush2.bf16.msra.mxu1 %v726_v48  ;;  %308 = vmatprep.subr.bf16.mxu0 %v727_v49 }
  0x4b   :  { %531 = vmatprep.subr.bf16.mxu1 %v729_v50 }
  0x4d   :  { %309 = vmatpush2.bf16.msra.mxu0 %v731_v51 }
  0x4e   :  { %532 = vmatpush2.bf16.msra.mxu1 %v732_v52  ;;  %310 = vmatprep.subr.bf16.mxu0 %v733_v53 }
  0x4f   :  { %533 = vmatprep.subr.bf16.mxu1 %v735_v54 }
  0x51   :  { %311 = vmatpush2.bf16.msra.mxu0 %v737_v55 }
  0x52   :  { %534 = vmatpush2.bf16.msra.mxu1 %v738_v56  ;;  %312 = vmatprep.subr.bf16.mxu0 %v739_v57 }
  0x53   :  { %535 = vmatprep.subr.bf16.mxu1 %v741_v58 }
  0x55   :  { %313 = vmatpush2.bf16.msra.mxu0 %v743_v59 }
  0x56   :  { %536 = vmatpush2.bf16.msra.mxu1 %v744_v60  ;;  %314 = vmatprep.subr.bf16.mxu0 %v745_v61 }
  0x57   :  { %537 = vmatprep.subr.bf16.mxu1 %v747_v62 }
  0x59   :  { %315 = vmatpush2.bf16.msra.mxu0 %v749_v63 }
  0x5a   :  { %538 = vmatpush2.bf16.msra.mxu1 %v750_v0 }
  0x5c   :  { %317 = vmatmul.mubr.bf16.vlgmr.msra.gmra.mxu0 %v751_v2 }
  0x5d   :  { %540 = vmatmul.mubr.bf16.vlgmr.msra.gmra.mxu1 %v751_v2  ;;  %326 = vmatprep.mubr.bf16.mxu0 %v580_v3 }
  0x5e   :  { %549 = vmatprep.mubr.bf16.mxu1 %v580_v3 }
  0x64   :  { %327 = vmatmul.mubr.bf16.gmra.mxu0 %v579_v4 }
  0x65   :  { %550 = vmatmul.mubr.bf16.gmra.mxu1 %v579_v4 }
 0x11c   :  { %v318_v5 = vpop.f32.mrf.mxu0 }
 0x11d   :  { %v541_v6 = vpop.f32.mrf.mxu1  ;;  %v335_v7 = vmax.f32 %v318_v5, 0.0 }
 0x11e   :  { %v558_v8 = vmax.f32 %v541_v6, 0.0  ;;  %v320_v9 = vpop.f32.mrf.mxu0 }
 0x11f   :  { %v543_v10 = vpop.f32.mrf.mxu1  ;;  %341 = vst [vmem:[%s863_s2] sm:$0xff] %v335_v7  ;;  %v336_v11 = vmax.f32 %v320_v9, 0.0 }
 0x120   :  { %645 = vst [vmem:[%s863_s2 + $0x30] sm:$0xff] %v558_v8  ;;  %v559_v12 = vmax.f32 %v543_v10, 0.0  ;;  %v322_v13 = vpop.f32.mrf.mxu0 }
 0x121   :  { %v545_v14 = vpop.f32.mrf.mxu1  ;;  %342 = vst [vmem:[%s863_s2 + $0x8] sm:$0xff] %v336_v11  ;;  %v337_v15 = vmax.f32 %v322_v13, 0.0 }
 0x122   :  { %646 = vst [vmem:[%s863_s2 + $0x38] sm:$0xff] %v559_v12  ;;  %v560_v16 = vmax.f32 %v545_v14, 0.0  ;;  %v324_v17 = vpop.f32.mrf.mxu0 }
 0x123   :  { %v547_v18 = vpop.f32.mrf.mxu1  ;;  %343 = vst [vmem:[%s863_s2 + $0x10] sm:$0xff] %v337_v15  ;;  %v338_v19 = vmax.f32 %v324_v17, 0.0 }
 0x124   :  { %647 = vst [vmem:[%s863_s2 + $0x40] sm:$0xff] %v560_v16  ;;  %v561_v20 = vmax.f32 %v547_v18, 0.0  ;;  %v328_v21 = vpop.f32.mrf.mxu0 }
 0x125   :  { %v551_v22 = vpop.f32.mrf.mxu1  ;;  %344 = vst [vmem:[%s863_s2 + $0x18] sm:$0xff] %v338_v19  ;;  %v339_v23 = vmax.f32 %v328_v21, 0.0 }
 0x126   :  { %648 = vst [vmem:[%s863_s2 + $0x48] sm:$0xff] %v561_v20  ;;  %v562_v24 = vmax.f32 %v551_v22, 0.0  ;;  %v330_v25 = vpop.f32.mrf.mxu0 }
 0x127   :  { %v553_v26 = vpop.f32.mrf.mxu1  ;;  %345 = vst [vmem:[%s863_s2 + $0x20] sm:$0xf] %v339_v23  ;;  %v340_v27 = vmax.f32 %v330_v25, 0.0 }
 0x128   :  { %649 = vst [vmem:[%s863_s2 + $0x50] sm:$0xf] %v562_v24  ;;  %v563_v28 = vmax.f32 %v553_v26, 0.0  ;;  %v332_v29 = vpop.f32.mrf.mxu0 }
 0x129   :  { %v555_v30 = vpop.f32.mrf.mxu1  ;;  %346 = vst [vmem:[%s863_s2 + $0x28] sm:$0xf] %v340_v27 }
 0x12a   :  { %650 = vst [vmem:[%s863_s2 + $0x58] sm:$0xf] %v563_v28  ;;  %v333_v31 = vpop.f32.mrf.mxu0 }
 0x12b   :  { %v556_v32 = vpop.f32.mrf.mxu1 }
 0x12c   :  { %575 = vsyncpa [#allocation3], 1 }
 0x12d   :  { %576 = vsyncpa [#allocation5], 1 }

</bundles_post_ra>
